<compile_context>
chip_gen: v7x
topology: tpu7x:2x2x1
jax: 0.10.0
libtpu: 0.0.40
codegen_flags: <defaults>
</compile_context>

<pallas_src>
import functools

import jax
import jax.numpy as jnp
from jax import lax
from jax.experimental import pallas as pl
from jax.experimental.pallas import tpu as pltpu


def _gaussian_noise_kernel(seed_ref, x_ref, o_ref, *, sigma):
    tr, lanes = x_ref.shape
    half = lanes // 2

    # Per-block seed (scalar path): keeps tiles statistically independent.
    seed = (
        seed_ref[0].astype(jnp.uint32)
        + pl.program_id(0).astype(jnp.uint32) * jnp.uint32(0x9E3779B9)
    )

    # Unique per-element counters over the half-width slab (one 32-bit draw
    # will serve two output lanes via the Box-Muller pair).
    row = lax.broadcasted_iota(jnp.int32, (tr, half), 0).astype(jnp.uint32)
    col = lax.broadcasted_iota(jnp.int32, (tr, half), 1).astype(jnp.uint32)
    ctr = row * jnp.uint32(half) + col

    # murmur3 fmix32-style mix (wrapping uint32 arithmetic, VPU only).
    h = ctr ^ seed
    h = h * jnp.uint32(0x9E3779B1)
    h = h ^ (h >> 16)
    h = h * jnp.uint32(0x85EBCA6B)
    h = h ^ (h >> 13)
    h = h * jnp.uint32(0xC2B2AE35)
    h = h ^ (h >> 16)

    # hi/lo 16 bits of one draw -> two uniforms.
    inv16 = jnp.float32(1.0 / 65536.0)
    u1 = ((h >> 16).astype(jnp.int32).astype(jnp.float32) + 1.0) * inv16  # (0,1]
    u2 = (h & jnp.uint32(0xFFFF)).astype(jnp.int32).astype(jnp.float32) * inv16  # [0,1)

    # Box-Muller pair: both outputs used (2 transcendentals per element).
    r = jnp.sqrt(-2.0 * jnp.log(u1))
    theta = jnp.float32(2.0 * jnp.pi) * u2
    z = jnp.concatenate([r * jnp.cos(theta), r * jnp.sin(theta)], axis=1)

    o_ref[...] = x_ref[...] + (jnp.float32(sigma) * z).astype(o_ref.dtype)


def _choose_lanes(total):
    for lanes in (1024, 512, 256, 128):
        if total % lanes == 0:
            return lanes
    return None


def gaussian_noise(x, sigma, seed, *, training=True):
    """x + sigma * N(0,1) when training, else x (identity).

    NOTE: pass a fresh integer `seed` every call/step for fresh noise.
    """
    if not training:
        return x

    orig_shape = x.shape
    dtype = x.dtype
    itemsize = jnp.dtype(dtype).itemsize
    total = int(x.size)

    lanes = _choose_lanes(total)
    pad = 0
    x_flat = x.reshape(-1)
    if lanes is None:
        # Fallback only: pad to a multiple of 128 lanes (costs one HBM copy).
        # TODO(synk): handle the ragged tail with an in-kernel mask instead.
        lanes = 128
        rows = -(-total // lanes)
        pad = rows * lanes - total
        x_flat = jnp.pad(x_flat, (0, pad))
    rows = (total + pad) // lanes
    x2d = x_flat.reshape(rows, lanes)

    # ~2 MiB per input block (safe for v7x's 64 MiB VMEM with the f32
    # temporaries), rows-per-block a multiple of 8.
    tr = max(8, (2 * 1024 * 1024) // (lanes * itemsize))
    tr = int(tr) // 8 * 8
    if tr >= rows:
        tr = rows
    grid = (pl.cdiv(rows, tr),)

    seed_arr = jnp.asarray([seed], dtype=jnp.int32)

    cost = pl.CostEstimate(
        flops=16 * rows * lanes,
        transcendentals=2 * rows * lanes,
        bytes_accessed=2 * rows * lanes * itemsize,
    )

    out2d = pl.pallas_call(
        functools.partial(_gaussian_noise_kernel, sigma=float(sigma)),
        out_shape=jax.ShapeDtypeStruct((rows, lanes), dtype),
        grid=grid,
        in_specs=[
            pl.BlockSpec(memory_space=pltpu.MemorySpace.SMEM),  # seed scalar
            pl.BlockSpec((tr, lanes), lambda i: (i, 0)),        # x tile
        ],
        out_specs=pl.BlockSpec((tr, lanes), lambda i: (i, 0)),
        compiler_params=pltpu.CompilerParams(
            dimension_semantics=("parallel",)
        ),
        cost_estimate=cost,
    )(seed_arr, x2d)

    out_flat = out2d.reshape(-1)
    if pad:
        out_flat = out_flat[:total]
    return out_flat.reshape(orig_shape)


if __name__ == "__main__":
    sigma = 0.1

    key = jax.random.PRNGKey(0)
    # Small NCHW input consistent with the module's usage.
    x = jax.random.normal(key, (2, 4, 16, 16), dtype=jnp.float32)

    # Training mode: x + sigma * N(0,1), noise generated in-kernel.
    y_train = gaussian_noise(x, sigma, seed=1234, training=True)
    y_train = jax.block_until_ready(y_train)

    # Eval mode: identity.
    y_eval = gaussian_noise(x, sigma, seed=1234, training=False)
    y_eval = jax.block_until_ready(y_eval)

    assert y_train.shape == x.shape and y_train.dtype == x.dtype
    assert bool(jnp.allclose(y_eval, x))

    # Sanity: noise has roughly the requested scale (loose statistical bound).
    noise = y_train - x
    std = float(jnp.std(noise))
    assert 0.5 * sigma < std < 1.5 * sigma, f"noise std {std} vs sigma {sigma}"

    print("KERNEL_OK")
</pallas_src>

<mosaic_0001>
module attributes {stable_mosaic.version = 11 : i64} {
  func.func @_gaussian_noise_kernel(%arg0: i32, %arg1: memref<1xi32, #tpu.memory_space<smem>>, %arg2: memref<2x1024xf32, #tpu.memory_space<vmem>>, %arg3: memref<2x1024xf32, #tpu.memory_space<vmem>>) attributes {dimension_semantics = [#tpu.dimension_semantics<parallel>], iteration_bounds = array<i64: 1>, scalar_prefetch = 0 : i64, scratch_operands = 0 : i64, tpu.core_type = #tpu.core_type<tc>, window_params = [{transform_indices = @transform_0, window_bounds = array<i64: 1>}, {transform_indices = @transform_1, window_bounds = array<i64: 2, 1024>}, {transform_indices = @transform_2, window_bounds = array<i64: 2, 1024>}]} {
    %c0 = arith.constant 0 : index
    %0 = memref.load %arg1[%c0] : memref<1xi32, #tpu.memory_space<smem>>
    %c-1640531527_i32 = arith.constant -1640531527 : i32
    %1 = arith.muli %arg0, %c-1640531527_i32 : i32
    %2 = arith.addi %0, %1 : i32
    %3 = tpu.iota {dimensions = array<i32: 0>} : vector<2x512xi32>
    %4 = tpu.iota {dimensions = array<i32: 1>} : vector<2x512xi32>
    %c512_i32 = arith.constant 512 : i32
    %5 = vector.broadcast %c512_i32 : i32 to vector<2x512xi32>
    %6 = arith.muli %3, %5 : vector<2x512xi32>
    %7 = arith.addi %6, %4 : vector<2x512xi32>
    %8 = vector.broadcast %2 : i32 to vector<2x512xi32>
    %9 = arith.xori %7, %8 : vector<2x512xi32>
    %c-1640531535_i32 = arith.constant -1640531535 : i32
    %10 = vector.broadcast %c-1640531535_i32 : i32 to vector<2x512xi32>
    %11 = arith.muli %9, %10 : vector<2x512xi32>
    %c16_i32 = arith.constant 16 : i32
    %12 = vector.broadcast %c16_i32 : i32 to vector<2x512xi32>
    %13 = arith.shrui %11, %12 : vector<2x512xi32>
    %14 = arith.xori %11, %13 : vector<2x512xi32>
    %c-2048144789_i32 = arith.constant -2048144789 : i32
    %15 = vector.broadcast %c-2048144789_i32 : i32 to vector<2x512xi32>
    %16 = arith.muli %14, %15 : vector<2x512xi32>
    %c13_i32 = arith.constant 13 : i32
    %17 = vector.broadcast %c13_i32 : i32 to vector<2x512xi32>
    %18 = arith.shrui %16, %17 : vector<2x512xi32>
    %19 = arith.xori %16, %18 : vector<2x512xi32>
    %c-1028477387_i32 = arith.constant -1028477387 : i32
    %20 = vector.broadcast %c-1028477387_i32 : i32 to vector<2x512xi32>
    %21 = arith.muli %19, %20 : vector<2x512xi32>
    %c16_i32_0 = arith.constant 16 : i32
    %22 = vector.broadcast %c16_i32_0 : i32 to vector<2x512xi32>
    %23 = arith.shrui %21, %22 : vector<2x512xi32>
    %24 = arith.xori %21, %23 : vector<2x512xi32>
    %c16_i32_1 = arith.constant 16 : i32
    %25 = vector.broadcast %c16_i32_1 : i32 to vector<2x512xi32>
    %26 = arith.shrui %24, %25 : vector<2x512xi32>
    %27 = arith.sitofp %26 : vector<2x512xi32> to vector<2x512xf32>
    %cst = arith.constant 1.000000e+00 : f32
    %28 = vector.broadcast %cst : f32 to vector<2x512xf32>
    %29 = arith.addf %27, %28 : vector<2x512xf32>
    %cst_2 = arith.constant 1.52587891E-5 : f32
    %30 = vector.broadcast %cst_2 : f32 to vector<2x512xf32>
    %31 = arith.mulf %29, %30 : vector<2x512xf32>
    %c65535_i32 = arith.constant 65535 : i32
    %32 = vector.broadcast %c65535_i32 : i32 to vector<2x512xi32>
    %33 = arith.andi %24, %32 : vector<2x512xi32>
    %34 = arith.sitofp %33 : vector<2x512xi32> to vector<2x512xf32>
    %cst_3 = arith.constant 1.52587891E-5 : f32
    %35 = vector.broadcast %cst_3 : f32 to vector<2x512xf32>
    %36 = arith.mulf %34, %35 : vector<2x512xf32>
    %37 = math.log %31 : vector<2x512xf32>
    %cst_4 = arith.constant -2.000000e+00 : f32
    %38 = vector.broadcast %cst_4 : f32 to vector<2x512xf32>
    %39 = arith.mulf %38, %37 : vector<2x512xf32>
    %40 = math.sqrt %39 : vector<2x512xf32>
    %cst_5 = arith.constant 6.28318548 : f32
    %41 = vector.broadcast %cst_5 : f32 to vector<2x512xf32>
    %42 = arith.mulf %41, %36 : vector<2x512xf32>
    %43 = math.cos %42 : vector<2x512xf32>
    %44 = arith.mulf %40, %43 : vector<2x512xf32>
    %45 = math.sin %42 : vector<2x512xf32>
    %46 = arith.mulf %40, %45 : vector<2x512xf32>
    %47 = tpu.concatenate %44, %46 in 1 : vector<2x512xf32>, vector<2x512xf32> -> vector<2x1024xf32>
    %c0_6 = arith.constant 0 : index
    %c0_7 = arith.constant 0 : index
    %48 = vector.load %arg2[%c0_6, %c0_7] : memref<2x1024xf32, #tpu.memory_space<vmem>>, vector<2x1024xf32>
    %cst_8 = arith.constant 1.000000e-01 : f32
    %49 = vector.broadcast %cst_8 : f32 to vector<2x1024xf32>
    %50 = arith.mulf %49, %47 : vector<2x1024xf32>
    %51 = arith.addf %48, %50 : vector<2x1024xf32>
    %c0_9 = arith.constant 0 : index
    %c0_10 = arith.constant 0 : index
    %52 = vector.load %arg3[%c0_9, %c0_10] : memref<2x1024xf32, #tpu.memory_space<vmem>>, vector<2x1024xf32>
    tpu.vector_store %arg3[%c0_9, %c0_10], %51 {strides = array<i32>} : memref<2x1024xf32, #tpu.memory_space<vmem>>, vector<2x1024xf32>,
    return
  }
  func.func @transform_0(%arg0: i32) -> i32 {
    %c0_i32 = arith.constant 0 : i32
    %c0_i32_0 = arith.constant 0 : i32
    return %c0_i32 : i32
  }
  func.func @transform_1(%arg0: i32) -> (i32, i32) {
    %c0_i32 = arith.constant 0 : i32
    %c0_i32_0 = arith.constant 0 : i32
    return %arg0, %c0_i32 : i32, i32
  }
  func.func @transform_2(%arg0: i32) -> (i32, i32) {
    %c0_i32 = arith.constant 0 : i32
    %c0_i32_0 = arith.constant 0 : i32
    return %arg0, %c0_i32 : i32, i32
  }
}

</mosaic_0001>

<bundles_post_ra>
// kernel: tpu_custom_call.1
= control target key start
LH: loop header
LB: loop body
LE: loop exit
PB: predicated region body
PF: predicated region fallthrough
CT: control target
= control target key end

     0   :  { %8 = vsyncpa [#allocation4], 0  ;;  %s1678_s0 = inlined_call_operand.<no memory space> [shape: s32[1], index: 0, kind: input, shape index: {}]   ;;  %s1679_s1 = inlined_call_operand.hbm [shape: f32[2,1024], index: 1, kind: input, shape index: {}]   ;;  %s1680_s2 = inlined_call_operand.hbm [shape: f32[2,1024], index: 2, kind: output, shape index: {}]  }
   0x1   :  { %9 = vsyncpa [#allocation5], 0  ;;  %s1199_s9 = smov [#allocation3]   ;;  %s1151_s13 = scalar_lea.hbm %s1679_s1, 256 }
   0x2   :  { %s18_s10 = sshll.u32 %s1199_s9, 4  ;;  %p1152_p0 = scmp.ne.s32.totalorder %s1679_s1, %s1151_s13  ;;  %s19_s10 = int_to_ptr.vmem [resolvable:$true] %s18_s10 }
   0x3   :  { %p1155_p1 = scmp.lt.u32.totalorder %s1151_s13, %s1679_s1 }
   0x5   :  { %p1157_p2 = pnand %p1155_p1, %p1152_p0 }
   0x7   :  { %1160 = shalt.err (!%p1157_p2)
}
   0x8   :  { %s1161_s18 = scalar_lea.vmem %s19_s10, 256  ;;  %p1166_p4 = scmp.lt.s32.totalorder %s19_s10, %s19_s10 }
   0x9   :  { %p1162_p3 = scmp.ne.s32.totalorder %s19_s10, %s1161_s18  ;;  %p1167_p5 = scmp.lt.s32.totalorder %s1161_s18, %s1161_s18 }
   0xb   :  { %p1168_p6 = por %p1167_p5, %p1166_p4 }
   0xd   :  { %p1169_p7 = pnand %p1168_p6, %p1162_p3 }
   0xf   :  { %1172 = shalt.err (!%p1169_p7)
}
  0x10   :  { %21 = dma.hbm_to_vmem [thread:$0]  %s1679_s1, 256, %s19_s10, [#allocation4]  }
  0x11   :  { %1195 = dma.done.wait [#allocation4], 256  }
  0x12   :  { %1196 = vsyncadd [#allocation4], 4294967040  ;;  %v28_v0 = vlaneseq  ;;  %v40_v6 = vstv %s1678_s0  ;;  %s1207_s0 = smov [#allocation6]  }
  0x13   :  { %s1053_s1 = sshll.u32 %s1207_s0, 4  ;;  %s1054_s1 = int_to_ptr.vmem [resolvable:$true] %s1053_s1 }
  0x14   :  { %v1235_v1 = vshrl.u32 %v28_v0, 7  ;;  %v31_v2 = vand.u32 127, %v28_v0  ;;  %s1173_s23 = scalar_lea.vmem %s1054_s1, 256  ;;  %p1178_p9 = scmp.lt.s32.totalorder %s1054_s1, %s1054_s1 }
  0x15   :  { %p1174_p8 = scmp.ne.s32.totalorder %s1054_s1, %s1173_s23  ;;  %p1179_p10 = scmp.lt.s32.totalorder %s1173_s23, %s1173_s23 }
  0x16   :  { %v32_v3 = vadd.s32 128, %v31_v2  ;;  %v33_v4 = vadd.s32 256, %v31_v2  ;;  %v35_v5 = vmul.u32 512, %v1235_v1  ;;  %v34_v13 = vadd.s32 384, %v31_v2 }
  0x17   :  { %p1180_p11 = por %p1179_p10, %p1178_p9 }
  0x18   :  { %v36_v7 = vadd.s32 %v35_v5, %v31_v2  ;;  %v37_v8 = vadd.s32 %v35_v5, %v32_v3  ;;  %v38_v9 = vadd.s32 %v35_v5, %v33_v4  ;;  %v39_v19 = vadd.s32 %v35_v5, %v34_v13 }
  0x19   :  { %p1181_p12 = pnand %p1180_p11, %p1174_p8 }
  0x1a   :  { %v41_v10 = vxor.u32 %v40_v6, %v36_v7  ;;  %v42_v11 = vxor.u32 %v40_v6, %v37_v8  ;;  %v43_v12 = vxor.u32 %v40_v6, %v38_v9  ;;  %v44_v26 = vxor.u32 %v40_v6, %v39_v19 }
  0x1c   :  { %v45_v14 = vmul.u32 2654435761, %v41_v10  ;;  %v46_v15 = vmul.u32 2654435761, %v42_v11 }
  0x1d   :  { %v47_v16 = vmul.u32 2654435761, %v43_v12  ;;  %v48_v33 = vmul.u32 2654435761, %v44_v26  ;;  %v1200_v12 = vmov 683565275  }
  0x1e   :  { %v49_v17 = vshrl.u32 %v45_v14, 16  ;;  %v50_v18 = vshrl.u32 %v46_v15, 16 }
  0x1f   :  { %v51_v20 = vshrl.u32 %v47_v16, 16  ;;  %v52_v40 = vshrl.u32 %v48_v33, 16 }
  0x20   :  { %v53_v21 = vxor.u32 %v49_v17, %v45_v14  ;;  %v54_v22 = vxor.u32 %v50_v18, %v46_v15  ;;  %v1201_v14 = vmov 2475754826  }
  0x21   :  { %v55_v23 = vxor.u32 %v51_v20, %v47_v16  ;;  %v56_v46 = vxor.u32 %v52_v40, %v48_v33 }
  0x22   :  { %v57_v24 = vmul.u32 2246822507, %v53_v21  ;;  %v58_v25 = vmul.u32 2246822507, %v54_v22  ;;  %v1202_v21 = vmov 2131351028  }
  0x23   :  { %v59_v27 = vmul.u32 2246822507, %v55_v23  ;;  %v60_v51 = vmul.u32 2246822507, %v56_v46  ;;  %v1203_v23 = vmov 2102212464  }
  0x24   :  { %v61_v28 = vshrl.u32 %v57_v24, 13  ;;  %v62_v29 = vshrl.u32 %v58_v25, 13 }
  0x25   :  { %v63_v30 = vshrl.u32 %v59_v27, 13  ;;  %v64_v56 = vshrl.u32 %v60_v51, 13 }
  0x26   :  { %v65_v31 = vxor.u32 %v61_v28, %v57_v24  ;;  %v66_v32 = vxor.u32 %v62_v29, %v58_v25 }
  0x27   :  { %v67_v34 = vxor.u32 %v63_v30, %v59_v27  ;;  %v68_v61 = vxor.u32 %v64_v56, %v60_v51 }
  0x28   :  { %v69_v35 = vmul.u32 3266489909, %v65_v31  ;;  %v70_v36 = vmul.u32 3266489909, %v66_v32  ;;  %v1204_v32 = vmov 920167782  }
  0x29   :  { %v71_v37 = vmul.u32 3266489909, %v67_v34  ;;  %v72_v3 = vmul.u32 3266489909, %v68_v61 }
  0x2a   :  { %v73_v38 = vshrl.u32 %v69_v35, 16  ;;  %v74_v39 = vshrl.u32 %v70_v36, 16 }
  0x2b   :  { %v75_v43 = vshrl.u32 %v71_v37, 16  ;;  %v76_v10 = vshrl.u32 %v72_v3, 16 }
  0x2c   :  { %v1241_v41 = vxor.u32 %v73_v38, %v69_v35  ;;  %v1243_v42 = vxor.u32 %v74_v39, %v70_v36  ;;  %v1205_v35 = vmov 1326507024  }
  0x2d   :  { %v1247_v48 = vxor.u32 %v75_v43, %v71_v37  ;;  %v1264_v18 = vxor.u32 %v76_v10, %v72_v3 }
  0x2e   :  { %v97_v44 = vand.u32 65535, %v1241_v41  ;;  %v98_v45 = vand.u32 65535, %v1243_v42 }
  0x2f   :  { %v99_v53 = vand.u32 65535, %v1247_v48  ;;  %v100_v56 = vand.u32 65535, %v1264_v18 }
  0x30   :  { %v101_v47 = vcvt.s32.f32 %v97_v44  ;;  %v102_v49 = vcvt.s32.f32 %v98_v45 }
  0x31   :  { %v103_v58 = vcvt.s32.f32 %v99_v53 }
  0x32   :  { %v105_v50 = vmul.f32 1.5258789e-05, %v101_v47  ;;  %v106_v54 = vmul.f32 1.5258789e-05, %v102_v49 }
  0x33   :  { %v107_v0 = vmul.f32 1.5258789e-05, %v103_v58 }
  0x34   :  { %v1249_v52 = vmul.f32 6.2831855, %v105_v50  ;;  %v1253_v59 = vmul.f32 6.2831855, %v106_v54 }
  0x35   :  { %v1259_v7 = vmul.f32 6.2831855, %v107_v0 }
  0x36   :  { %v156_v55 = vand.u32 2139095040, %v1249_v52  ;;  %v153_v62 = vand.u32 2147483647, %v1249_v52  ;;  %v259_v2 = vand.u32 2139095040, %v1253_v59  ;;  %v256_v26 = vand.u32 2147483647, %v1253_v59 }
  0x37   :  { %v362_v17 = vand.u32 2139095040, %v1259_v7 }
  0x38   :  { %v157_v57 = vshrl.u32 %v156_v55, 23  ;;  %v160_v5 = vand.u32 8388607, %v153_v62  ;;  %v260_v8 = vshrl.u32 %v259_v2, 23  ;;  %v263_v0 = vand.u32 8388607, %v256_v26 }
  0x39   :  { %v363_v30 = vshrl.u32 %v362_v17, 23 }
  0x3a   :  { %v1062_v60 = vadd.s32 4294967169, %v157_v57  ;;  %v161_v11 = vor.u32 8388608, %v160_v5  ;;  %v1066_v16 = vadd.s32 4294967169, %v260_v8 }
  0x3b   :  { %v1070_v45 = vadd.s32 4294967169, %v363_v30 }
  0x3c   :  { %v163_v63 = vadd.s32 1, %v1062_v60  ;;  %v1269_v25 = vshll.u32 %v161_v11, 8  ;;  %v266_v29 = vadd.s32 1, %v1066_v16  ;;  %v264_v11 = vor.u32 8388608, %v263_v0 }
  0x3d   :  { %v369_v2 = vadd.s32 1, %v1070_v45 }
  0x3e   :  { %vm164_vm0 = vcmp.gt.s32.totalorder %v163_v63, 0  ;;  %vm267_vm5 = vcmp.gt.s32.totalorder %v266_v29, 0  ;;  %v304_v45 = vshll.u32 %v264_v11, 8 }
  0x3f   :  { %v165_v4 = vsel %vm164_vm0, %v163_v63, 0  ;;  %v268_v60 = vsel %vm267_vm5, %v266_v29, 0  ;;  %vm370_vm7 = vcmp.gt.s32.totalorder %v369_v2, 0 }
  0x40   :  { %v167_v6 = vand.u32 31, %v165_v4  ;;  %v166_v19 = vshrl.u32 %v165_v4, 5  ;;  %v270_v8 = vand.u32 31, %v268_v60 }
  0x42   :  { %v168_v9 = vsub.s32 32, %v167_v6  ;;  %v170_v13 = vshll.u32 %v1200_v12, %v167_v6  ;;  %v173_v20 = vshll.u32 %v1201_v14, %v167_v6  ;;  %v176_v22 = vshll.u32 %v1202_v21, %v167_v6 }
  0x43   :  { %v179_v24 = vshll.u32 %v1203_v23, %v167_v6  ;;  %v182_v34 = vshll.u32 %v1204_v32, %v167_v6  ;;  %vm185_vm1 = vcmp.lt.s32.totalorder %v166_v19, 1  ;;  %vm187_vm2 = vcmp.lt.s32.totalorder %v166_v19, 3 }
  0x44   :  { %v171_v15 = vshrl.u32 %v1201_v14, %v168_v9  ;;  %v174_v28 = vshrl.u32 %v1202_v21, %v168_v9  ;;  %v177_v31 = vshrl.u32 %v1203_v23, %v168_v9  ;;  %v180_v33 = vshrl.u32 %v1204_v32, %v168_v9 }
  0x45   :  { %v183_v36 = vshrl.u32 %v1205_v35, %v168_v9  ;;  %v169_v37 = vshrl.u32 %v1200_v12, %v168_v9  ;;  %vm188_vm3 = vcmp.lt.s32.totalorder %v166_v19, 4  ;;  %vm186_vm4 = vcmp.lt.s32.totalorder %v166_v19, 2 }
  0x46   :  { %v172_v27 = vor.u32 %v171_v15, %v170_v13  ;;  %v175_v38 = vor.u32 %v174_v28, %v173_v20  ;;  %v178_v39 = vor.u32 %v177_v31, %v176_v22  ;;  %v181_v40 = vor.u32 %v180_v33, %v179_v24 }
  0x47   :  { %v184_v43 = vor.u32 %v183_v36, %v182_v34  ;;  %v269_v6 = vshrl.u32 %v268_v60, 5  ;;  %v104_v9 = vcvt.s32.f32 %v100_v56  ;;  %v271_v15 = vsub.s32 32, %v270_v8 }
  0x48   :  { %v193_v44 = vsel %vm185_vm1, %v172_v27, %v175_v38  ;;  %v190_v46 = vsel %vm188_vm3, %v178_v39, 2102212464  ;;  %v194_v47 = vsel %vm188_vm3, %v181_v40, 920167782  ;;  %v197_v49 = vsel %vm185_vm1, %v175_v38, %v178_v39 }
  0x49   :  { %v198_v50 = vsel %vm188_vm3, %v184_v43, 1326507024  ;;  %v189_v51 = vsel %vm185_vm1, %v169_v37, %v172_v27  ;;  %v191_v53 = vsel %vm187_vm2, %v175_v38, %v190_v46  ;;  %v195_v54 = vsel %vm187_vm2, %v178_v39, %v194_v47 }
  0x4a   :  { %v199_v55 = vsel %vm187_vm2, %v181_v40, %v198_v50  ;;  %v196_v57 = vsel %vm186_vm4, %v193_v44, %v195_v54  ;;  %v192_v3 = vsel %vm186_vm4, %v189_v51, %v191_v53  ;;  %v273_v16 = vshll.u32 %v1200_v12, %v270_v8 }
  0x4b   :  { %v200_v58 = vsel %vm186_vm4, %v197_v49, %v199_v55  ;;  %v1292_v4 = vmul.u32.u64.low %v1269_v25, %v196_v57  ;;  %v1293_v5 = vmul.u32.u64.high %v1269_v25, %v196_v57, %v1292_v4  ;;  %v208_v10 = vmul.u32 %v1269_v25, %v192_v3 }
  0x4c   :  { %v1285_v61 = vmul.u32.u64.low %v1269_v25, %v200_v58  ;;  %v1286_v63 = vmul.u32.u64.high %v1269_v25, %v200_v58, %v1285_v61  ;;  %vm288_vm8 = vcmp.lt.s32.totalorder %v269_v6, 1  ;;  %v276_v17 = vshll.u32 %v1201_v14, %v270_v8 }
  0x4d   :  { %v211_v13 = vadd.s32 1, %v1293_v5  ;;  %v279_v19 = vshll.u32 %v1202_v21, %v270_v8  ;;  %v282_v20 = vshll.u32 %v1203_v23, %v270_v8  ;;  %v285_v22 = vshll.u32 %v1204_v32, %v270_v8 }
  0x4e   :  { %vm210_vm6 = vc.u32 %v1286_v63, %v1292_v4  ;;  %v272_v25 = vshrl.u32 %v1200_v12, %v271_v15  ;;  %v274_v27 = vshrl.u32 %v1201_v14, %v271_v15  ;;  %v277_v28 = vshrl.u32 %v1202_v21, %v271_v15 }
  0x4f   :  { %v212_v24 = vsel %vm210_vm6, %v211_v13, %v1293_v5  ;;  %v280_v30 = vshrl.u32 %v1203_v23, %v271_v15  ;;  %v283_v31 = vshrl.u32 %v1204_v32, %v271_v15  ;;  %v286_v33 = vshrl.u32 %v1205_v35, %v271_v15 }
  0x50   :  { %v213_v29 = vadd.s32 %v212_v24, %v208_v10  ;;  %v275_v34 = vor.u32 %v274_v27, %v273_v16  ;;  %v278_v36 = vor.u32 %v277_v28, %v276_v17  ;;  %vm290_vm9 = vcmp.lt.s32.totalorder %v269_v6, 3 }
  0x51   :  { %vm291_vm10 = vcmp.lt.s32.totalorder %v269_v6, 4  ;;  %v281_v38 = vor.u32 %v280_v30, %v279_v19  ;;  %v284_v39 = vor.u32 %v283_v31, %v282_v20  ;;  %v287_v40 = vor.u32 %v286_v33, %v285_v22 }
  0x52   :  { %v214_v37 = vadd.s32 536870912, %v213_v29  ;;  %vm289_vm11 = vcmp.lt.s32.totalorder %v269_v6, 2  ;;  %v292_v43 = vsel %vm288_vm8, %v272_v25, %v275_v34  ;;  %v296_v44 = vsel %vm288_vm8, %v275_v34, %v278_v36 }
  0x53   :  { %v293_v47 = vsel %vm291_vm10, %v281_v38, 2102212464  ;;  %v297_v49 = vsel %vm291_vm10, %v284_v39, 920167782  ;;  %v371_v50 = vsel %vm370_vm7, %v369_v2, 0  ;;  %v300_v54 = vsel %vm288_vm8, %v278_v36, %v281_v38 }
  0x54   :  { %v1314_v46 = vshrl.u32 %v214_v37, 30  ;;  %v294_v51 = vsel %vm290_vm9, %v278_v36, %v293_v47  ;;  %v298_v53 = vsel %vm290_vm9, %v281_v38, %v297_v49  ;;  %v301_v55 = vsel %vm291_vm10, %v287_v40, 1326507024 }
  0x55   :  { %v108_v56 = vmul.f32 1.5258789e-05, %v104_v9  ;;  %v299_v57 = vsel %vm289_vm11, %v296_v44, %v298_v53  ;;  %v302_v60 = vsel %vm290_vm9, %v284_v39, %v301_v55  ;;  %v295_v2 = vsel %vm289_vm11, %v292_v43, %v294_v51 }
  0x56   :  { %v216_v58 = vshll.u32 %v1314_v46, 30  ;;  %v1326_v61 = vmul.u32.u64.low %v304_v45, %v299_v57  ;;  %v1327_v0 = vmul.u32.u64.high %v304_v45, %v299_v57, %v1326_v61  ;;  %v303_v3 = vsel %vm289_vm11, %v300_v54, %v302_v60 }
  0x57   :  { %v359_v5 = vand.u32 2147483647, %v1259_v7  ;;  %v373_v8 = vand.u32 31, %v371_v50  ;;  %v1333_v10 = vmul.u32.u64.low %v304_v45, %v303_v3  ;;  %v1334_v11 = vmul.u32.u64.high %v304_v45, %v303_v3, %v1333_v10 }
  0x58   :  { %v1336_v13 = vsub.s32 %v213_v29, %v216_v58  ;;  %v311_v15 = vmul.u32 %v304_v45, %v295_v2  ;;  %v314_v16 = vadd.s32 1, %v1327_v0  ;;  %v1339_v17 = vmul.f32 6.2831855, %v108_v56 }
  0x59   :  { %v374_v9 = vsub.s32 32, %v373_v8  ;;  %v366_v19 = vand.u32 8388607, %v359_v5  ;;  %v1343_v20 = vshrl.u32 %v371_v50, 5  ;;  %v376_v6 = vshll.u32 %v1200_v12, %v373_v8 }
  0x5a   :  { %vm313_vm12 = vc.u32 %v1334_v11, %v1326_v61  ;;  %v379_v22 = vshll.u32 %v1201_v14, %v373_v8  ;;  %v382_v24 = vshll.u32 %v1202_v21, %v373_v8  ;;  %v385_v25 = vshll.u32 %v1203_v23, %v373_v8 }
  0x5b   :  { %v315_v27 = vsel %vm313_vm12, %v314_v16, %v1327_v0  ;;  %v377_v28 = vshrl.u32 %v1201_v14, %v374_v9  ;;  %v380_v29 = vshrl.u32 %v1202_v21, %v374_v9  ;;  %v383_v30 = vshrl.u32 %v1203_v23, %v374_v9 }
  0x5c   :  { %v219_v31 = vsub.s32 0, %v1336_v13  ;;  %v316_v33 = vadd.s32 %v315_v27, %v311_v15  ;;  %v386_v34 = vshrl.u32 %v1204_v32, %v374_v9  ;;  %v388_v36 = vshll.u32 %v1204_v32, %v373_v8 }
  0x5d   :  { %v81_v37 = vshrl.u32 %v1241_v41, 16  ;;  %v367_v38 = vor.u32 8388608, %v366_v19  ;;  %v389_v39 = vshrl.u32 %v1205_v35, %v374_v9  ;;  %vm391_vm13 = vcmp.lt.s32.totalorder %v1343_v20, 1 }
  0x5e   :  { %v317_v40 = vadd.s32 536870912, %v316_v33  ;;  %v387_v43 = vor.u32 %v386_v34, %v385_v25  ;;  %v465_v44 = vand.u32 2139095040, %v1339_v17  ;;  %v378_v45 = vor.u32 %v377_v28, %v376_v6 }
  0x5f   :  { %v381_v47 = vor.u32 %v380_v29, %v379_v22  ;;  %v384_v49 = vor.u32 %v383_v30, %v382_v24  ;;  %vm394_vm14 = vcmp.lt.s32.totalorder %v1343_v20, 4  ;;  %v1063_v50 = vmin.u32 %v219_v31, %v1336_v13 }
  0x60   :  { %v1364_v51 = vshrl.u32 %v317_v40, 30  ;;  %v390_v53 = vor.u32 %v389_v39, %v388_v36  ;;  %vm393_vm15 = vcmp.lt.s32.totalorder %v1343_v20, 3  ;;  %v82_v41 = vshrl.u32 %v1243_v42, 16 }
  0x61   :  { %v83_v54 = vshrl.u32 %v1247_v48, 16  ;;  %v85_v55 = vcvt.s32.f32 %v81_v37  ;;  %v407_v56 = vshll.u32 %v367_v38, 8  ;;  %v375_v58 = vshrl.u32 %v1200_v12, %v374_v9 }
  0x62   :  { %v319_v57 = vshll.u32 %v1364_v51, 30  ;;  %v400_v60 = vsel %vm394_vm14, %v387_v43, 920167782  ;;  %v466_v0 = vshrl.u32 %v465_v44, 23  ;;  %vm392_vm0 = vcmp.lt.s32.totalorder %v1343_v20, 2 }
  0x63   :  { %v399_v2 = vsel %vm391_vm13, %v378_v45, %v381_v47  ;;  %v401_v42 = vsel %vm393_vm15, %v384_v49, %v400_v60  ;;  %v403_v48 = vsel %vm391_vm13, %v381_v47, %v384_v49  ;;  %v221_v3 = vclz %v1063_v50 }
  0x64   :  { %v1380_v8 = vsub.s32 %v316_v33, %v319_v57  ;;  %v396_v10 = vsel %vm394_vm14, %v384_v49, 2102212464  ;;  %v404_v9 = vsel %vm394_vm14, %v390_v53, 1326507024  ;;  %v84_v15 = vshrl.u32 %v1264_v18, 16 }
  0x65   :  { %v86_v16 = vcvt.s32.f32 %v82_v41  ;;  %v87_v19 = vcvt.s32.f32 %v83_v54  ;;  %v405_v6 = vsel %vm393_vm15, %v387_v43, %v404_v9  ;;  %v402_v24 = vsel %vm392_vm0, %v399_v2, %v401_v42 }
  0x66   :  { %v322_v22 = vsub.s32 0, %v1380_v8  ;;  %v406_v25 = vsel %vm392_vm0, %v403_v48, %v405_v6  ;;  %v1074_v27 = vadd.s32 4294967169, %v466_v0  ;;  %v395_v28 = vsel %vm391_vm13, %v375_v58, %v378_v45 }
  0x67   :  { %v397_v18 = vsel %vm393_vm15, %v381_v47, %v396_v10  ;;  %v1398_v29 = vmul.u32.u64.low %v407_v56, %v406_v25  ;;  %v1399_v30 = vmul.u32.u64.high %v407_v56, %v406_v25, %v1398_v29  ;;  %v89_v31 = vadd.f32 1.0, %v85_v55 }
  0x68   :  { %v1064_v33 = vadd.s32 4294967294, %v221_v3  ;;  %v1067_v34 = vmin.u32 %v322_v22, %v1380_v8  ;;  %v88_v36 = vcvt.s32.f32 %v84_v15  ;;  %v90_v39 = vadd.f32 1.0, %v86_v16 }
  0x69   :  { %v1402_v37 = vmul.u32.u64.low %v407_v56, %v402_v24  ;;  %v1403_v38 = vmul.u32.u64.high %v407_v56, %v402_v24, %v1402_v37  ;;  %v398_v43 = vsel %vm392_vm0, %v395_v28, %v397_v18  ;;  %v472_v44 = vadd.s32 1, %v1074_v27 }
  0x6a   :  { %v324_v40 = vclz %v1067_v34  ;;  %v91_v45 = vadd.f32 1.0, %v87_v19  ;;  %v93_v47 = vmul.f32 1.5258789e-05, %v89_v31  ;;  %vm1065_vm1 = vcmp.lt.s32.totalorder %v1064_v33, 0 }
  0x6b   :  { %vm416_vm2 = vc.u32 %v1399_v30, %v1402_v37  ;;  %vm473_vm3 = vcmp.gt.s32.totalorder %v472_v44, 0  ;;  %v414_v50 = vmul.u32 %v407_v56, %v398_v43  ;;  %v417_v53 = vadd.s32 1, %v1403_v38 }
  0x6c   :  { %v1068_v49 = vadd.s32 4294967294, %v324_v40  ;;  %v474_v41 = vsel %vm473_vm3, %v472_v44, 0  ;;  %v92_v54 = vadd.f32 1.0, %v88_v36  ;;  %v94_v55 = vmul.f32 1.5258789e-05, %v90_v39 }
  0x6d   :  { %v476_v57 = vand.u32 31, %v474_v41  ;;  %v95_v58 = vmul.f32 1.5258789e-05, %v91_v45  ;;  %v224_v60 = vsel %vm1065_vm1, 0, %v1064_v33  ;;  %v418_v20 = vsel %vm416_vm2, %v417_v53, %v1403_v38 }
  0x6e   :  { %1119 = vlog2.f32 %v93_v47  ;;  %vm1069_vm4 = vcmp.lt.s32.totalorder %v1068_v49, 0  ;;  %v419_v0 = vadd.s32 %v418_v20, %v414_v50  ;;  %v96_v42 = vmul.f32 1.5258789e-05, %v92_v54 }
  0x6f   :  { %v477_v2 = vsub.s32 32, %v476_v57  ;;  %1121 = vlog2.f32 %v94_v55  ;;  %v229_v48 = vsub.s32 4294967266, %v224_v60  ;;  %v462_v3 = vand.u32 2147483647, %v1339_v17 }
  0x70   :  { %1123 = vlog2.f32 %v95_v58  ;;  %v209_v56 = vadd.s32 %v1292_v4, %v1286_v63  ;;  %v312_v10 = vadd.s32 %v1326_v61, %v1334_v11  ;;  %v420_v9 = vadd.s32 536870912, %v419_v0 }
  0x71   :  { %v225_v15 = vsub.s32 32, %v224_v60  ;;  %v327_v16 = vsel %vm1069_vm4, 0, %v1068_v49  ;;  %v479_v19 = vshll.u32 %v1200_v12, %v476_v57  ;;  %v480_v6 = vshrl.u32 %v1201_v14, %v477_v2 }
  0x72   :  { %v1419_v22 = vshrl.u32 %v420_v9, 30  ;;  %v482_v24 = vshll.u32 %v1201_v14, %v476_v57  ;;  %v483_v25 = vshrl.u32 %v1202_v21, %v477_v2  ;;  %v488_v27 = vshll.u32 %v1203_v23, %v476_v57 }
  0x73   :  { %v230_v28 = vadd.s32 127, %v229_v48  ;;  %v469_v63 = vand.u32 8388607, %v462_v3  ;;  %v475_v4 = vshrl.u32 %v474_v41, 5  ;;  %v489_v61 = vshrl.u32 %v1204_v32, %v477_v2 }
  0x74   :  { %v332_v11 = vsub.s32 4294967266, %v327_v16  ;;  %v422_v18 = vshll.u32 %v1419_v22, 30  ;;  %v485_v29 = vshll.u32 %v1202_v21, %v476_v57  ;;  %v486_v31 = vshrl.u32 %v1203_v23, %v477_v2 }
  0x75   :  { %v226_v14 = vshll.u32 %v1336_v13, %v224_v60  ;;  %v227_v33 = vshrl.u32 %v209_v56, %v225_v15  ;;  %v481_v34 = vor.u32 %v480_v6, %v479_v19  ;;  %v490_v36 = vor.u32 %v489_v61, %v488_v27 }
  0x76   :  { %v1431_v38 = vsub.s32 %v419_v0, %v422_v18  ;;  %v484_v39 = vor.u32 %v483_v25, %v482_v24  ;;  %v491_v40 = vshll.u32 %v1204_v32, %v476_v57  ;;  %v492_v43 = vshrl.u32 %v1205_v35, %v477_v2 }
  0x77   :  { %v328_v44 = vsub.s32 32, %v327_v16  ;;  %v470_v45 = vor.u32 8388608, %v469_v63  ;;  %vm494_vm5 = vcmp.lt.s32.totalorder %v475_v4, 1  ;;  %vm497_vm6 = vcmp.lt.s32.totalorder %v475_v4, 4 }
  0x78   :  { %v1120_v47 = vpop.eup %1119  ;;  %v231_v21 = vshll.u32 %v230_v28, 23  ;;  %v333_v49 = vadd.s32 127, %v332_v11  ;;  %v425_v23 = vsub.s32 0, %v1431_v38  ;;  %v487_v13 = vor.u32 %v486_v31, %v485_v29 }
  0x79   :  { %v1122_v50 = vpop.eup %1121  ;;  %v478_v53 = vshrl.u32 %v1200_v12, %v477_v2  ;;  %vm495_vm7 = vcmp.lt.s32.totalorder %v475_v4, 2  ;;  %vm496_vm8 = vcmp.lt.s32.totalorder %v475_v4, 3  ;;  %v503_v41 = vsel %vm497_vm6, %v490_v36, 920167782 }
  0x7a   :  { %v1124_v32 = vpop.eup %1123  ;;  %v1071_v35 = vmin.u32 %v425_v23, %v1431_v38  ;;  %v493_v54 = vor.u32 %v492_v43, %v491_v40  ;;  %v499_v55 = vsel %vm497_vm6, %v487_v13, 2102212464  ;;  %v502_v57 = vsel %vm494_vm5, %v481_v34, %v484_v39 }
  0x7b   :  { %1125 = vlog2.f32 %v96_v42  ;;  %v329_v58 = vshll.u32 %v1380_v8, %v327_v16  ;;  %v330_v60 = vshrl.u32 %v312_v10, %v328_v44  ;;  %v510_v20 = vshll.u32 %v470_v45, 8 }
  0x7c   :  { %v228_v0 = vor.u32 %v227_v33, %v226_v14  ;;  %v334_v48 = vshll.u32 %v333_v49, 23  ;;  %v427_v12 = vclz %v1071_v35  ;;  %v504_v2 = vsel %vm496_vm8, %v487_v13, %v503_v41 }
  0x7d   :  { %v498_v56 = vsel %vm494_vm5, %v478_v53, %v481_v34  ;;  %v500_v9 = vsel %vm496_vm8, %v484_v39, %v499_v55  ;;  %v505_v15 = vsel %vm495_vm7, %v502_v57, %v504_v2  ;;  %v506_v19 = vsel %vm494_vm5, %v484_v39, %v487_v13 }
  0x7e   :  { %v232_v6 = vor.u32 4788187, %v231_v21  ;;  %v415_v42 = vadd.s32 %v1402_v37, %v1399_v30  ;;  %v1072_v8 = vadd.s32 4294967294, %v427_v12  ;;  %v507_v10 = vsel %vm497_vm6, %v493_v54, 1326507024 }
  0x7f   :  { %v331_v16 = vor.u32 %v330_v60, %v329_v58  ;;  %v508_v24 = vsel %vm496_vm8, %v490_v36, %v507_v10  ;;  %v1451_v25 = vmul.u32.u64.low %v510_v20, %v505_v15  ;;  %v1452_v27 = vmul.u32.u64.high %v510_v20, %v505_v15, %v1451_v25 }
  0x80   :  { %v335_v28 = vor.u32 4788187, %v334_v48  ;;  %vm1073_vm9 = vcmp.lt.s32.totalorder %v1072_v8, 0  ;;  %v501_v63 = vsel %vm495_vm7, %v498_v56, %v500_v9  ;;  %v509_v61 = vsel %vm495_vm7, %v506_v19, %v508_v24 }
  0x81   :  { %v110_v11 = vmul.f32 0.6931472, %v1120_v47  ;;  %v430_v18 = vsel %vm1073_vm9, 0, %v1072_v8  ;;  %v1457_v29 = vmul.u32.u64.low %v510_v20, %v509_v61  ;;  %v1458_v30 = vmul.u32.u64.high %v510_v20, %v509_v61, %v1457_v29 }
  0x82   :  { %v233_v37 = vand.u32 2147483647, %v232_v6  ;;  %v235_v31 = vcvt.s32.f32 %v228_v0  ;;  %v431_v14 = vsub.s32 32, %v430_v18  ;;  %v435_v33 = vsub.s32 4294967266, %v430_v18 }
  0x83   :  { %v112_v34 = vmul.f32 0.6931472, %v1122_v50  ;;  %v432_v36 = vshll.u32 %v1431_v38, %v430_v18  ;;  %v517_v39 = vmul.u32 %v510_v20, %v501_v63  ;;  %v520_v40 = vadd.s32 1, %v1452_v27 }
  0x84   :  { %v336_v43 = vand.u32 2147483647, %v335_v28  ;;  %v338_v44 = vcvt.s32.f32 %v331_v16  ;;  %v433_v45 = vshrl.u32 %v415_v42, %v431_v14  ;;  %v436_v4 = vadd.s32 127, %v435_v33 }
  0x85   :  { %v1126_v21 = vpop.eup %1125  ;;  %v1462_v47 = vmul.f32 -2.0, %v110_v11  ;;  %vm519_vm10 = vc.u32 %v1458_v30, %v1451_v25  ;;  %v114_v49 = vmul.f32 0.6931472, %v1124_v32  ;;  %v236_v23 = vmul.f32 %v235_v31, %v233_v37 }
  0x86   :  { %v437_v13 = vshll.u32 %v436_v4, 23  ;;  %v521_v50 = vsel %vm519_vm10, %v520_v40, %v1452_v27  ;;  %v1467_v53 = vmul.f32 -2.0, %v112_v34  ;;  %v434_v38 = vor.u32 %v433_v45, %v432_v36 }
  0x87   :  { %v522_v41 = vadd.s32 %v521_v50, %v517_v39  ;;  %v339_v35 = vmul.f32 %v338_v44, %v336_v43  ;;  %1127 = vrsqrt.f32 %v1462_v47  ;;  %v116_v57 = vmul.f32 0.6931472, %v1126_v21 }
  0x88   :  { %v438_v54 = vor.u32 4788187, %v437_v13  ;;  %v1470_v58 = vmul.f32 -2.0, %v114_v49  ;;  %vm155_vm11 = vcmp.lt.s32.totalorder %v1249_v52, 0  ;;  %v237_v60 = vxor.u32 2147483648, %v236_v23 }
  0x89   :  { %v523_v55 = vadd.s32 536870912, %v522_v41  ;;  %1129 = vrsqrt.f32 %v1467_v53  ;;  %v441_v20 = vcvt.s32.f32 %v434_v38  ;;  %v340_v48 = vxor.u32 2147483648, %v339_v35 }
  0x8a   :  { %v439_v32 = vand.u32 2147483647, %v438_v54  ;;  %vm258_vm12 = vcmp.lt.s32.totalorder %v1253_v59, 0  ;;  %v1478_v2 = vmul.f32 -2.0, %v116_v57  ;;  %vm1482_vm13 = vcmp.le.f32.partialorder %v153_v62, 0.7853982 }
  0x8b   :  { %v1474_v0 = vshrl.u32 %v523_v55, 30  ;;  %v238_v9 = vsel %vm155_vm11, %v237_v60, %v236_v23  ;;  %1131 = vrsqrt.f32 %v1470_v58  ;;  %v239_v6 = vsub.s32 4, %v1314_v46 }
  0x8c   :  { %v442_v15 = vmul.f32 %v441_v20, %v439_v32  ;;  %vm1494_vm14 = vcmp.le.f32.partialorder %v256_v26, 0.7853982  ;;  %v341_v62 = vsel %vm258_vm12, %v340_v48, %v339_v35  ;;  %v241_v8 = vsel %vm1482_vm13, %v1249_v52, %v238_v9 }
  0x8d   :  { %v525_v12 = vshll.u32 %v1474_v0, 30  ;;  %1133 = vrsqrt.f32 %v1478_v2  ;;  %v344_v24 = vsel %vm1494_vm14, %v1253_v59, %v341_v62  ;;  %v240_v28 = vsel %vm155_vm11, %v239_v6, %v1314_v46 }
  0x8e   :  { %v443_v26 = vxor.u32 2147483648, %v442_v15  ;;  %1135 = vcosq.f32 %v241_v8  ;;  %vm1514_vm15 = vcmp.le.f32.partialorder %v359_v5, 0.7853982  ;;  %vm361_vm0 = vcmp.lt.s32.totalorder %v1259_v7, 0 }
  0x8f   :  { %v1489_v19 = vsub.s32 %v522_v41, %v525_v12  ;;  %vm123_vm1 = vcmp.eq.f32.partialorder %v1462_v47, inf  ;;  %1137 = vsinq.f32 %v241_v8  ;;  %v342_v11 = vsub.s32 4, %v1364_v51 }
  0x90   :  { %vm125_vm2 = vcmp.eq.f32.partialorder %v1462_v47, 0.0  ;;  %v126_v46 = vand.u32 2147483648, %v1462_v47  ;;  %1139 = vcosq.f32 %v344_v24  ;;  %v242_v5 = vsel %vm1482_vm13, 0, %v240_v28 }
  0x91   :  { %v528_v10 = vsub.s32 0, %v1489_v19  ;;  %v1128_v16 = vpop.eup %1127  ;;  %1141 = vsinq.f32 %v344_v24  ;;  %v444_v37 = vsel %vm361_vm0, %v443_v26, %v442_v15  ;;  %vm130_vm3 = vcmp.eq.f32.partialorder %v1467_v53, inf }
  0x92   :  { %v122_v29 = vmul.f32 %v1128_v16, %v1462_v47  ;;  %vm132_vm4 = vcmp.eq.f32.partialorder %v1467_v53, 0.0  ;;  %v133_v33 = vand.u32 2147483648, %v1467_v53  ;;  %v343_v36 = vsel %vm258_vm12, %v342_v11, %v1364_v51 }
  0x93   :  { %v1075_v27 = vmin.u32 %v528_v10, %v1489_v19  ;;  %v1130_v61 = vpop.eup %1129  ;;  %v445_v39 = vsub.s32 4, %v1419_v22  ;;  %v518_v40 = vadd.s32 %v1451_v25, %v1458_v30  ;;  %v140_v43 = vand.u32 2147483648, %v1470_v58 }
  0x94   :  { %v129_v14 = vmul.f32 %v1130_v61, %v1467_v53  ;;  %v447_v44 = vsel %vm1514_vm15, %v1259_v7, %v444_v37  ;;  %v662_v4 = vadd.s32 3, %v242_v5  ;;  %v124_v21 = vsel %vm123_vm1, %v1462_v47, %v122_v29 }
  0x95   :  { %v530_v18 = vclz %v1075_v27  ;;  %v1132_v34 = vpop.eup %1131  ;;  %v1552_v50 = vand.u32 3, %v242_v5  ;;  %v345_v38 = vsel %vm1494_vm14, 0, %v343_v36  ;;  %v446_v41 = vsel %vm361_vm0, %v445_v39, %v1419_v22 }
  0x96   :  { %v131_v25 = vsel %vm130_vm3, %v1467_v53, %v129_v14  ;;  %v1550_v30 = vmul.f32 %v1132_v34, %v1470_v58  ;;  %1143 = vcosq.f32 %v447_v44  ;;  %v1561_v57 = vsel %vm125_vm2, %v126_v46, %v124_v21 }
  0x97   :  { %v1076_v31 = vadd.s32 4294967294, %v530_v18  ;;  %v1134_v13 = vpop.eup %1133  ;;  %v1563_v60 = vand.u32 3, %v345_v38  ;;  %1145 = vsinq.f32 %v447_v44  ;;  %vm464_vm6 = vcmp.lt.s32.totalorder %v1339_v17, 0 }
  0x98   :  { %v1136_v55 = vpop.eup %1135  ;;  %v663_v32 = vand.u32 3, %v662_v4  ;;  %v1567_v48 = vmul.f32 %v1134_v13, %v1478_v2  ;;  %vm1571_vm7 = vcmp.le.f32.partialorder %v462_v3, 0.7853982  ;;  %v766_v56 = vadd.s32 3, %v345_v38 }
  0x99   :  { %vm1077_vm5 = vcmp.lt.s32.totalorder %v1076_v31, 0  ;;  %v1138_v20 = vpop.eup %1137  ;;  %v1577_v15 = vsel %vm132_vm4, %v133_v33, %v131_v25  ;;  %vm247_vm8 = vcmp.lt.s32.totalorder %v1552_v50, 2  ;;  %vm248_vm9 = vcmp.eq.s32.totalorder %v1552_v50, 0 }
  0x9a   :  { %v533_v45 = vsel %vm1077_vm5, 0, %v1076_v31  ;;  %v1140_v9 = vpop.eup %1139  ;;  %vm245_vm10 = vweird.f32 %v1249_v52  ;;  %vm251_vm11 = vcmp.eq.s32.totalorder %v1552_v50, 2  ;;  %v249_v8 = vxor.u32 2147483648, %v1138_v20 }
  0x9b   :  { %v534_v49 = vsub.s32 32, %v533_v45  ;;  %v535_v51 = vshll.u32 %v1489_v19, %v533_v45  ;;  %v538_v23 = vsub.s32 4294967266, %v533_v45  ;;  %v448_v19 = vsel %vm1514_vm15, 0, %v446_v41  ;;  %v1142_v6 = vpop.eup %1141 }
  0x9c   :  { %v1585_v3 = vand.u32 3, %v448_v19  ;;  %v252_v53 = vxor.u32 2147483648, %v1136_v55  ;;  %vm350_vm12 = vcmp.lt.s32.totalorder %v1563_v60, 2  ;;  %vm665_vm13 = vcmp.eq.s32.totalorder %v663_v32, 0 }
  0x9d   :  { %v536_v35 = vshrl.u32 %v518_v40, %v534_v49  ;;  %v539_v54 = vadd.s32 127, %v538_v23  ;;  %v548_v16 = vsub.s32 4, %v1474_v0  ;;  %vm668_vm15 = vcmp.eq.s32.totalorder %v663_v32, 2 }
  0x9e   :  { %v767_v24 = vand.u32 3, %v766_v56  ;;  %vm351_vm1 = vcmp.eq.s32.totalorder %v1563_v60, 0  ;;  %v352_v26 = vxor.u32 2147483648, %v1142_v6  ;;  %v355_v27 = vxor.u32 2147483648, %v1140_v9 }
  0x9f   :  { %v537_v12 = vor.u32 %v536_v35, %v535_v51  ;;  %v540_v47 = vshll.u32 %v539_v54, 23  ;;  %v870_v28 = vadd.s32 3, %v448_v19  ;;  %vm354_vm2 = vcmp.eq.s32.totalorder %v1563_v60, 2 }
  0xa0   :  { %vm664_vm4 = vcmp.lt.s32.totalorder %v663_v32, 2  ;;  %v250_v61 = vsel %vm248_vm9, %v1136_v55, %v249_v8  ;;  %v253_v11 = vsel %vm251_vm11, %v252_v53, %v1138_v20  ;;  %v667_v18 = vsel %vm665_vm13, %v1136_v55, %v249_v8  ;;  %v1144_v46 = vpop.eup %1143 }
  0xa1   :  { %v541_v42 = vor.u32 4788187, %v540_v47  ;;  %v544_v62 = vcvt.s32.f32 %v537_v12  ;;  %v670_v29 = vsel %vm668_vm15, %v252_v53, %v1138_v20  ;;  %v549_v37 = vsel %vm464_vm6, %v548_v16, %v1474_v0  ;;  %v1146_v31 = vpop.eup %1145 }
  0xa2   :  { %vm769_vm5 = vcmp.eq.s32.totalorder %v767_v24, 0  ;;  %vm772_vm0 = vcmp.eq.s32.totalorder %v767_v24, 2  ;;  %vm139_vm3 = vcmp.eq.f32.partialorder %v1470_v58, 0.0  ;;  %vm144_vm14 = vcmp.eq.f32.partialorder %v1478_v2, inf }
  0xa3   :  { %v542_v10 = vand.u32 2147483647, %v541_v42  ;;  %v353_v14 = vsel %vm351_vm1, %v1140_v9, %v352_v26  ;;  %v356_v33 = vsel %vm354_vm2, %v355_v27, %v1142_v6  ;;  %vm457_vm9 = vcmp.eq.s32.totalorder %v1585_v3, 2 }
  0xa4   :  { %v871_v34 = vand.u32 3, %v870_v28  ;;  %v254_v36 = vsel %vm247_vm8, %v250_v61, %v253_v11  ;;  %v671_v39 = vsel %vm664_vm4, %v667_v18, %v670_v29  ;;  %vm768_vm11 = vcmp.lt.s32.totalorder %v767_v24, 2 }
  0xa5   :  { %v545_v63 = vmul.f32 %v544_v62, %v542_v10  ;;  %v551_v44 = vsel %vm1571_vm7, 0, %v549_v37  ;;  %v771_v45 = vsel %vm769_vm5, %v1140_v9, %v352_v26  ;;  %v774_v4 = vsel %vm772_vm0, %v355_v27, %v1142_v6 }
  0xa6   :  { %v357_v21 = vsel %vm350_vm12, %v353_v14, %v356_v33  ;;  %v455_v49 = vxor.u32 2147483648, %v1146_v31  ;;  %v458_v51 = vxor.u32 2147483648, %v1144_v46  ;;  %v255_v23 = vsel %vm245_vm10, nan, %v254_v36 }
  0xa7   :  { %v546_v5 = vxor.u32 2147483648, %v545_v63  ;;  %vm876_vm8 = vcmp.eq.s32.totalorder %v871_v34, 2  ;;  %v672_v13 = vsel %vm245_vm10, nan, %v671_v39  ;;  %v775_v25 = vsel %vm768_vm11, %v771_v45, %v774_v4 }
  0xa8   :  { %v974_v50 = vadd.s32 3, %v551_v44  ;;  %vm1690_vm12 = vweird.f32 %v1253_v59  ;;  %vm453_vm13 = vcmp.lt.s32.totalorder %v1585_v3, 2  ;;  %vm872_vm0 = vcmp.lt.s32.totalorder %v871_v34, 2 }
  0xa9   :  { %v547_v0 = vsel %vm464_vm6, %v546_v5, %v545_v63  ;;  %vm873_vm6 = vcmp.eq.s32.totalorder %v871_v34, 0  ;;  %v358_v41 = vsel %vm1690_vm12, nan, %v357_v21  ;;  %vm1691_vm15 = vcmp.eq.s32.totalorder %v1585_v3, 0  ;;  %vm1692_vm10 = vmmov %vm1690_vm12 }
  0xaa   :  { %v550_v40 = vsel %vm1571_vm7, %v1339_v17, %v547_v0  ;;  %vm1689_vm7 = vcmp.eq.f32.partialorder %v1470_v58, inf  ;;  %v456_v35 = vsel %vm1691_vm15, %v1144_v46, %v455_v49  ;;  %v459_v52 = vsel %vm457_vm9, %v458_v51, %v1146_v31 }
  0xab   :  { %1147 = vcosq.f32 %v550_v40  ;;  %v138_v38 = vsel %vm1689_vm7, %v1470_v58, %v1550_v30  ;;  %v875_v54 = vsel %vm873_vm6, %v1144_v46, %v455_v49  ;;  %v878_v55 = vsel %vm876_vm8, %v458_v51, %v1146_v31  ;;  %v989_v49 = vld [vmem:[#allocation3] sm:$0xff]  ;;  %v990_v51 = vld [vmem:[#allocation3 + $0x8] sm:$0xff] }
  0xac   :  { %1149 = vsinq.f32 %v550_v40  ;;  %v565_v60 = vmul.f32 %v255_v23, %v1561_v57  ;;  %v776_v32 = vsel %vm1692_vm10, nan, %v775_v25  ;;  %v985_v30 = vmul.f32 %v672_v13, %v1561_v57 }
  0xad   :  { %v1206_v20 = vmov 1983009808   ;;  %vm451_vm1 = vweird.f32 %v1259_v7  ;;  %v555_v12 = vand.u32 3, %v551_v44  ;;  %v975_v47 = vand.u32 3, %v974_v50 }
  0xae   :  { %v1010_v22 = vunpack.c.l.s4 %v1206_v20  ;;  %vm146_vm2 = vcmp.eq.f32.partialorder %v1478_v2, 0.0  ;;  %v460_v56 = vsel %vm453_vm13, %v456_v35, %v459_v52  ;;  %v566_v9 = vmul.f32 %v358_v41, %v1577_v15 }
  0xaf   :  { %v879_v19 = vsel %vm872_vm0, %v875_v54, %v878_v55  ;;  %v141_v59 = vsel %vm139_vm3, %v140_v43, %v138_v38  ;;  %v145_v57 = vsel %vm144_vm14, %v1478_v2, %v1567_v48  ;;  %v147_v6 = vand.u32 2147483648, %v1478_v2 }
  0xb0   :  { %v986_v3 = vmul.f32 %v776_v32, %v1577_v15  ;;  %vm554_vm4 = vweird.f32 %v1339_v17  ;;  %v991_v42 = vmul.f32 0.1, %v565_v60  ;;  %v995_v62 = vmul.f32 0.1, %v985_v30 }
  0xb1   :  { %v1011_v8 = vunpack.c.0.s8 %v1010_v22  ;;  %v461_v10 = vsel %vm451_vm1, nan, %v460_v56  ;;  %vm560_vm5 = vcmp.eq.s32.totalorder %v555_v12, 2  ;;  %v880_v58 = vsel %vm451_vm1, nan, %v879_v19 }
  0xb2   :  { %vm980_vm3 = vcmp.eq.s32.totalorder %v975_v47, 2  ;;  %vm557_vm14 = vcmp.eq.s32.totalorder %v555_v12, 0  ;;  %vm977_vm9 = vcmp.eq.s32.totalorder %v975_v47, 0  ;;  %v992_v16 = vmul.f32 0.1, %v566_v9 }
  0xb3   :  { %vm556_vm11 = vcmp.lt.s32.totalorder %v555_v12, 2  ;;  %vm976_vm6 = vcmp.lt.s32.totalorder %v975_v47, 2  ;;  %v996_v24 = vmul.f32 0.1, %v986_v3  ;;  %v567_v27 = vmul.f32 %v461_v10, %v141_v59 }
  0xb4   :  { %v987_v63 = vmul.f32 %v880_v58, %v141_v59  ;;  %v148_v61 = vsel %vm146_vm2, %v147_v6, %v145_v57  ;;  %v1014_v46 = vsub.s32 %v1011_v8, %v1235_v1  ;;  %v1007_v31 = vcombine.low %v991_v42, %v992_v16 }
  0xb5   :  { %v1148_v53 = vpop.eup %1147  ;;  %v1024_v14 = vcombine.low %v995_v62, %v996_v24  ;;  %v993_v36 = vmul.f32 0.1, %v567_v27 }
  0xb6   :  { %v1150_v43 = vpop.eup %1149  ;;  %v561_v48 = vxor.u32 2147483648, %v1148_v53  ;;  %v997_v0 = vmul.f32 0.1, %v987_v63  ;;  %v1015_v44 = vrot.slane %v1007_v31, %v1014_v46 }
  0xb7   :  { %v558_v15 = vxor.u32 2147483648, %v1150_v43  ;;  %v1032_v4 = vrot.slane %v1024_v14, %v1014_v46 }
  0xb8   :  { %v562_v26 = vsel %vm560_vm5, %v561_v48, %v1150_v43  ;;  %v982_v28 = vsel %vm980_vm3, %v561_v48, %v1150_v43 }
  0xb9   :  { %v559_v11 = vsel %vm557_vm14, %v1148_v53, %v558_v15  ;;  %v979_v7 = vsel %vm977_vm9, %v1148_v53, %v558_v15 }
  0xba   :  { %v563_v18 = vsel %vm556_vm11, %v559_v11, %v562_v26  ;;  %v983_v29 = vsel %vm976_vm6, %v979_v7, %v982_v28 }
  0xbb   :  { %v564_v5 = vsel %vm554_vm4, nan, %v563_v18  ;;  %v984_v37 = vsel %vm554_vm4, nan, %v983_v29 }
  0xbc   :  { %v568_v33 = vmul.f32 %v564_v5, %v148_v61  ;;  %v988_v34 = vmul.f32 %v984_v37, %v148_v61 }
  0xbe   :  { %v994_v2 = vmul.f32 0.1, %v568_v33  ;;  %v998_v39 = vmul.f32 0.1, %v988_v34 }
  0xc0   :  { %v1008_v40 = vcombine.low %v993_v36, %v994_v2  ;;  %v1025_v45 = vcombine.low %v997_v0, %v998_v39 }
  0xc2   :  { %v1022_v21 = vrot.slane %v1008_v40, %v1014_v46  ;;  %v1039_v1 = vrot.slane %v1025_v45, %v1014_v46 }
  0xc4   :  { %v1023_v17 = vcombine.low %v1015_v44, %v1022_v21  ;;  %v1040_v23 = vcombine.low %v1032_v4, %v1039_v1 }
  0xc6   :  { %v1043_v13 = vadd.f32 %v1023_v17, %v989_v49  ;;  %v1044_v25 = vadd.f32 %v1040_v23, %v990_v51 }
  0xc8   :  { %1045 = vst [vmem:[#allocation6] sm:$0xff] %v1043_v13  ;;  %1046 = vst [vmem:[#allocation6 + $0x8] sm:$0xff] %v1044_v25 }
  0xc9   :  { %1184 = shalt.err (!%p1181_p12)
}
  0xca   :  { %s1185_s26 = scalar_lea.hbm %s1680_s2, 256 }
  0xcb   :  { %p1186_p13 = scmp.ne.s32.totalorder %s1680_s2, %s1185_s26  ;;  %p1189_p0 = scmp.lt.u32.totalorder %s1185_s26, %s1680_s2 }
  0xcd   :  { %p1191_p1 = pnand %p1189_p0, %p1186_p13 }
  0xcf   :  { %1194 = shalt.err (!%p1191_p1)
}
  0xd0   :  { %1056 = dma.vmem_to_hbm [thread:$0]  %s1054_s1, 256, %s1680_s2, [#allocation5]  }
  0xd1   :  { %1197 = dma.done.wait [#allocation5], 256  }
  0xd2   :  { %1198 = vsyncadd [#allocation5], 4294967040 }
  0xd3   :  { %1060 = vsyncpa [#allocation4], 1 }
  0xd4   :  { %1061 = vsyncpa [#allocation5], 1 }

</bundles_post_ra>
